<compile_context>
chip_gen: v7x
topology: tpu7x:2x2x1
jax: 0.10.0
libtpu: 0.0.40
codegen_flags: <defaults>
</compile_context>

<pallas_src>
import functools

import jax
import jax.numpy as jnp
from jax.experimental import pallas as pl
from jax.experimental.pallas import tpu as pltpu


LEAKY_SLOPE = 0.01     # nn.LeakyReLU default
LN_EPS = 1e-5          # nn.LayerNorm default


def _round_up(n, m):
    return ((n + m - 1) // m) * m


def _chip_vmem_bytes():
    """Per-core VMEM capacity; conservative 64 MiB (v7x) fallback."""
    try:
        v = int(pltpu.get_tpu_info().vmem_capacity_bytes)
        if v > 0:
            return v
    except Exception:
        pass
    return 64 << 20


def _res_bottleneck_kernel(x_ref, wd_ref, bd_ref, wu_ref, bu_ref,
                           g_ref, b_ref, o_ref, *,
                           norm, n_rows, block_rows, mask_rows):
    x = x_ref[...]                                            # (tm, H)

    if mask_rows:
        # Ragged last block: zero the out-of-range rows (rows are independent,
        # and Pallas drops the OOB output rows on store; this just keeps the
        # garbage out of the math).
        row0 = pl.program_id(0) * block_rows
        rid = row0 + jax.lax.broadcasted_iota(jnp.int32, (x.shape[0], 1), 0)
        x = jnp.where(rid < n_rows, x, jnp.zeros_like(x))

    # down: Linear(H -> H/4). Feed the MXU in the weight dtype (bf16 fast path
    # on v5e/v6e/v7x when params are bf16); accumulate in f32.
    h = jnp.dot(x.astype(wd_ref.dtype), wd_ref[...],
                preferred_element_type=jnp.float32)
    h = h + bd_ref[...].astype(jnp.float32)

    # LeakyReLU (negative_slope = 0.01), f32 VPU math.
    h = jnp.where(h >= 0, h, LEAKY_SLOPE * h)

    # up: Linear(H/4 -> H) + residual.
    y = jnp.dot(h.astype(wu_ref.dtype), wu_ref[...],
                preferred_element_type=jnp.float32)
    y = y + bu_ref[...].astype(jnp.float32) + x.astype(jnp.float32)

    if norm:
        # One-pass LayerNorm statistics: var = E[y^2] - mean^2 (biased, like
        # torch); saves a (tm, H) temporary and a second reduction sweep.
        mean = jnp.mean(y, axis=-1, keepdims=True)
        msq = jnp.mean(y * y, axis=-1, keepdims=True)
        var = jnp.maximum(msq - mean * mean, 0.0)
        y = (y - mean) * jax.lax.rsqrt(var + LN_EPS)
        y = y * g_ref[...].astype(jnp.float32) + b_ref[...].astype(jnp.float32)

    o_ref[...] = y.astype(o_ref.dtype)


def res_bottleneck(x, params, *, norm=True, row_tile=1024):
    """x: (..., H). Returns same shape/dtype."""
    orig_shape = x.shape
    H = orig_shape[-1]
    x2 = x.reshape(-1, H)
    N = x2.shape[0]

    wd = params["w_down"]          # (H, H//4)
    bd = params["b_down"]          # (1, H//4)
    wu = params["w_up"]            # (H//4, H)
    bu = params["b_up"]            # (1, H)
    gamma = params["ln_gamma"]     # (1, H)
    beta = params["ln_beta"]       # (1, H)
    h4 = wd.shape[1]

    itemsize = x2.dtype.itemsize
    # Sublane alignment: 8 for 32-bit, 16 for bf16/fp16, 32 for int8.
    sub = 8 * max(1, 4 // max(1, itemsize))

    w_bytes = sum(int(a.size) * a.dtype.itemsize
                  for a in (wd, bd, wu, bu, gamma, beta))

    chip_vmem = _chip_vmem_bytes()
    budget = max(chip_vmem - (8 << 20), 8 << 20)   # leave ~8 MiB margin

    # Row tile: as large as possible (amortizes per-step overhead), aligned to
    # the sublane packing, then auto-shrunk against the detected VMEM budget.
    tm = max(sub, min(_round_up(row_tile, sub), _round_up(N, sub)))

    def _est(tm_, w_buf):
        return (2 * 2 * tm_ * H * itemsize       # in + out tiles, double-buffered
                + w_buf * w_bytes                # resident params
                + 4 * tm_ * (H + h4) * 4         # f32 intermediates / headroom
                + (2 << 20))

    while _est(tm, 1) > budget and tm > sub:
        tm = max(sub, _round_up(tm // 2, sub))

    # Make sure the grid has >= 2 steps so "parallel" can use both v7x TCs.
    if -(-N // tm) < 2:
        tm2 = _round_up(max(1, -(-N // 2)), sub)
        if -(-N // tm2) >= 2:
            tm = tm2

    grid = (pl.cdiv(N, tm),)
    mask_rows = (N % tm) != 0

    vmem_bytes = int(min(max(_est(tm, 2), 1 << 20), budget))

    kernel = functools.partial(_res_bottleneck_kernel, norm=norm,
                               n_rows=N, block_rows=tm, mask_rows=mask_rows)

    row_spec = pl.BlockSpec((tm, H), lambda i: (i, 0))

    flops = 4 * N * H * h4                       # two matmuls: 2*M*N*K each
    bytes_accessed = 2 * N * H * itemsize + w_bytes
    cost = pl.CostEstimate(flops=int(flops),
                           transcendentals=int(N if norm else 0),
                           bytes_accessed=int(bytes_accessed))

    def _run(single_buffer_consts):
        if single_buffer_consts:
            def const(a):
                # Same block every grid step -> VMEM-resident; single-buffered
                # to halve the constant-operand residency.
                return pl.BlockSpec(a.shape, lambda i: (0,) * a.ndim,
                                    pipeline_mode=pl.Buffered(1))
        else:
            def const(a):
                return pl.BlockSpec(a.shape, lambda i: (0,) * a.ndim)

        out = pl.pallas_call(
            kernel,
            out_shape=jax.ShapeDtypeStruct((N, H), x.dtype),
            grid=grid,
            in_specs=[
                row_spec,
                const(wd), const(bd), const(wu), const(bu),
                const(gamma), const(beta),
            ],
            out_specs=row_spec,
            compiler_params=pltpu.CompilerParams(
                dimension_semantics=("parallel",),   # megacore-shardable on v7x
                vmem_limit_bytes=vmem_bytes),
            cost_estimate=cost,
        )(x2, wd, bd, wu, bu, gamma, beta)
        return jax.block_until_ready(out)

    try:
        out = _run(True)
    except Exception:
        # Fallback for JAX builds that reject pl.Buffered(1) on constants.
        out = _run(False)

    return out.reshape(orig_shape)


def init_params(key, hidden_size, dtype=jnp.float32):
    """Deterministic synthetic parameters (matches module shapes)."""
    h4 = hidden_size // 4
    k_wd, k_bd, k_wu, k_bu = jax.random.split(key, 4)
    # torch nn.Linear default init: U(-1/sqrt(fan_in), 1/sqrt(fan_in))
    lim_d = 1.0 / (hidden_size ** 0.5)
    lim_u = 1.0 / (h4 ** 0.5)
    return {
        # stored already transposed to (in, out) for x @ W
        "w_down": jax.random.uniform(k_wd, (hidden_size, h4), jnp.float32, -lim_d, lim_d).astype(dtype),
        "b_down": jax.random.uniform(k_bd, (1, h4), jnp.float32, -lim_d, lim_d).astype(dtype),
        "w_up": jax.random.uniform(k_wu, (h4, hidden_size), jnp.float32, -lim_u, lim_u).astype(dtype),
        "b_up": jax.random.uniform(k_bu, (1, hidden_size), jnp.float32, -lim_u, lim_u).astype(dtype),
        "ln_gamma": jnp.ones((1, hidden_size), dtype),
        "ln_beta": jnp.zeros((1, hidden_size), dtype),
    }


def _reference(x, params, norm=True):
    """Plain-JAX reference for sanity checking (f32 math, two-pass LN)."""
    xf = x.astype(jnp.float32)
    h = xf @ params["w_down"].astype(jnp.float32) + params["b_down"].astype(jnp.float32)
    h = jnp.where(h >= 0, h, LEAKY_SLOPE * h)
    y = h @ params["w_up"].astype(jnp.float32) + params["b_up"].astype(jnp.float32) + xf
    if norm:
        mean = jnp.mean(y, -1, keepdims=True)
        var = jnp.mean((y - mean) ** 2, -1, keepdims=True)
        y = ((y - mean) * jax.lax.rsqrt(var + LN_EPS)
             * params["ln_gamma"].astype(jnp.float32)
             + params["ln_beta"].astype(jnp.float32))
    return y.astype(x.dtype)


if __name__ == "__main__":
    key = jax.random.PRNGKey(0)
    k_x, k_x2, k_p = jax.random.split(key, 3)

    # Small demo consistent with the module: hidden_size=32 -> bottleneck 8.
    B, S, H = 2, 8, 32
    params = init_params(k_p, H)

    # Case 1: f32, small N -> tile is auto-split into a 2-step grid.
    x = jax.random.normal(k_x, (B, S, H), jnp.float32)
    out = jax.block_until_ready(res_bottleneck(x, params, norm=True))
    ref = _reference(x.reshape(-1, H), params, norm=True).reshape(B, S, H)
    assert out.shape == x.shape and out.dtype == x.dtype
    assert jnp.allclose(out, ref, atol=1e-4, rtol=1e-4), "mismatch vs reference (norm=True)"

    # Case 2: ragged multi-step grid (N=300, row_tile=128 -> 3 steps, last
    # block masked in-kernel), plus the norm=False branch.
    x2 = jax.random.normal(k_x2, (3, 100, H), jnp.float32)
    out2 = jax.block_until_ready(res_bottleneck(x2, params, norm=True, row_tile=128))
    ref2 = _reference(x2.reshape(-1, H), params, norm=True).reshape(3, 100, H)
    assert jnp.allclose(out2, ref2, atol=1e-4, rtol=1e-4), "mismatch vs reference (tiled/ragged)"

    out3 = jax.block_until_ready(res_bottleneck(x2, params, norm=False, row_tile=128))
    ref3 = _reference(x2.reshape(-1, H), params, norm=False).reshape(3, 100, H)
    assert jnp.allclose(out3, ref3, atol=1e-4, rtol=1e-4), "mismatch vs reference (norm=False)"

    # Case 3: bf16 params + bf16 activations -> exercises the bf16 MXU path.
    params_bf = init_params(k_p, H, dtype=jnp.bfloat16)
    x_bf = x.astype(jnp.bfloat16)
    out_bf = jax.block_until_ready(res_bottleneck(x_bf, params_bf, norm=True))
    ref_bf = _reference(x_bf.reshape(-1, H), params_bf, norm=True).reshape(B, S, H)
    assert out_bf.dtype == jnp.bfloat16
    assert bool(jnp.all(jnp.isfinite(out_bf.astype(jnp.float32))))
    assert jnp.allclose(out_bf.astype(jnp.float32), ref_bf.astype(jnp.float32),
                        atol=5e-2, rtol=5e-2), "mismatch vs reference (bf16)"

    print("KERNEL_OK")
</pallas_src>

<mosaic_0001>
module attributes {stable_mosaic.version = 11 : i64} {
  func.func @_res_bottleneck_kernel(%arg0: i32, %arg1: memref<8x32xf32, #tpu.memory_space<vmem>>, %arg2: memref<32x8xf32, #tpu.memory_space<vmem>>, %arg3: memref<1x8xf32, #tpu.memory_space<vmem>>, %arg4: memref<8x32xf32, #tpu.memory_space<vmem>>, %arg5: memref<1x32xf32, #tpu.memory_space<vmem>>, %arg6: memref<1x32xf32, #tpu.memory_space<vmem>>, %arg7: memref<1x32xf32, #tpu.memory_space<vmem>>, %arg8: memref<8x32xf32, #tpu.memory_space<vmem>>) attributes {dimension_semantics = [#tpu.dimension_semantics<parallel>], iteration_bounds = array<i64: 2>, scalar_prefetch = 0 : i64, scratch_operands = 0 : i64, tpu.core_type = #tpu.core_type<tc>, window_params = [{transform_indices = @transform_0, window_bounds = array<i64: 8, 32>}, {pipeline_mode = #tpu.pipeline_mode<synchronous>, transform_indices = @transform_1, window_bounds = array<i64: 32, 8>}, {pipeline_mode = #tpu.pipeline_mode<synchronous>, transform_indices = @transform_2, window_bounds = array<i64: 1, 8>}, {pipeline_mode = #tpu.pipeline_mode<synchronous>, transform_indices = @transform_3, window_bounds = array<i64: 8, 32>}, {pipeline_mode = #tpu.pipeline_mode<synchronous>, transform_indices = @transform_4, window_bounds = array<i64: 1, 32>}, {pipeline_mode = #tpu.pipeline_mode<synchronous>, transform_indices = @transform_5, window_bounds = array<i64: 1, 32>}, {pipeline_mode = #tpu.pipeline_mode<synchronous>, transform_indices = @transform_6, window_bounds = array<i64: 1, 32>}, {transform_indices = @transform_7, window_bounds = array<i64: 8, 32>}]} {
    %c0 = arith.constant 0 : index
    %c0_0 = arith.constant 0 : index
    %0 = vector.load %arg1[%c0, %c0_0] : memref<8x32xf32, #tpu.memory_space<vmem>>, vector<8x32xf32>
    %c0_1 = arith.constant 0 : index
    %c0_2 = arith.constant 0 : index
    %1 = vector.load %arg2[%c0_1, %c0_2] : memref<32x8xf32, #tpu.memory_space<vmem>>, vector<32x8xf32>
    %cst = arith.constant dense<0.000000e+00> : vector<8x8xf32>
    %2 = tpu.matmul %0, %1, %cst {dimension_numbers = #tpu.dot_dimension_numbers<[1], [0], [0], [1], [0, 0, 1, 1], [], []>} : vector<8x32xf32>, vector<32x8xf32>, vector<8x8xf32> -> vector<8x8xf32>
    %c0_3 = arith.constant 0 : index
    %c0_4 = arith.constant 0 : index
    %3 = vector.load %arg3[%c0_3, %c0_4] : memref<1x8xf32, #tpu.memory_space<vmem>>, vector<1x8xf32>
    %4 = vector.broadcast %3 : vector<1x8xf32> to vector<8x8xf32>
    %5 = arith.addf %2, %4 : vector<8x8xf32>
    %cst_5 = arith.constant 0.000000e+00 : f32
    %6 = vector.broadcast %cst_5 : f32 to vector<8x8xf32>
    %7 = arith.cmpf oge, %5, %6 : vector<8x8xf32>
    %cst_6 = arith.constant 0.00999999977 : f32
    %8 = vector.broadcast %cst_6 : f32 to vector<8x8xf32>
    %9 = arith.mulf %8, %5 : vector<8x8xf32>
    %10 = arith.select %7, %5, %9 : vector<8x8xi1>, vector<8x8xf32>
    %c0_7 = arith.constant 0 : index
    %c0_8 = arith.constant 0 : index
    %11 = vector.load %arg4[%c0_7, %c0_8] : memref<8x32xf32, #tpu.memory_space<vmem>>, vector<8x32xf32>
    %cst_9 = arith.constant dense<0.000000e+00> : vector<8x32xf32>
    %12 = tpu.matmul %10, %11, %cst_9 {dimension_numbers = #tpu.dot_dimension_numbers<[1], [0], [0], [1], [0, 0, 1, 1], [], []>} : vector<8x8xf32>, vector<8x32xf32>, vector<8x32xf32> -> vector<8x32xf32>
    %c0_10 = arith.constant 0 : index
    %c0_11 = arith.constant 0 : index
    %13 = vector.load %arg5[%c0_10, %c0_11] : memref<1x32xf32, #tpu.memory_space<vmem>>, vector<1x32xf32>
    %14 = vector.broadcast %13 : vector<1x32xf32> to vector<8x32xf32>
    %15 = arith.addf %12, %14 : vector<8x32xf32>
    %16 = arith.addf %15, %0 : vector<8x32xf32>
    %cst_12 = arith.constant dense<0.000000e+00> : vector<8xf32>
    %17 = vector.multi_reduction <add>, %16, %cst_12 [1] : vector<8x32xf32> to vector<8xf32>
    %18 = vector.shape_cast %17 : vector<8xf32> to vector<8x1xf32>
    %cst_13 = arith.constant 3.200000e+01 : f32
    %19 = vector.broadcast %cst_13 : f32 to vector<8x1xf32>
    %20 = arith.divf %18, %19 : vector<8x1xf32>
    %21 = arith.mulf %16, %16 : vector<8x32xf32>
    %cst_14 = arith.constant dense<0.000000e+00> : vector<8xf32>
    %22 = vector.multi_reduction <add>, %21, %cst_14 [1] : vector<8x32xf32> to vector<8xf32>
    %23 = vector.shape_cast %22 : vector<8xf32> to vector<8x1xf32>
    %cst_15 = arith.constant 3.200000e+01 : f32
    %24 = vector.broadcast %cst_15 : f32 to vector<8x1xf32>
    %25 = arith.divf %23, %24 : vector<8x1xf32>
    %26 = arith.mulf %20, %20 : vector<8x1xf32>
    %27 = arith.subf %25, %26 : vector<8x1xf32>
    %cst_16 = arith.constant 0.000000e+00 : f32
    %28 = vector.broadcast %cst_16 : f32 to vector<8x1xf32>
    %29 = arith.maximumf %27, %28 : vector<8x1xf32>
    %30 = vector.broadcast %20 : vector<8x1xf32> to vector<8x32xf32>
    %31 = arith.subf %16, %30 : vector<8x32xf32>
    %cst_17 = arith.constant 9.99999974E-6 : f32
    %32 = vector.broadcast %cst_17 : f32 to vector<8x1xf32>
    %33 = arith.addf %29, %32 : vector<8x1xf32>
    %34 = math.rsqrt %33 : vector<8x1xf32>
    %35 = vector.broadcast %34 : vector<8x1xf32> to vector<8x32xf32>
    %36 = arith.mulf %31, %35 : vector<8x32xf32>
    %c0_18 = arith.constant 0 : index
    %c0_19 = arith.constant 0 : index
    %37 = vector.load %arg6[%c0_18, %c0_19] : memref<1x32xf32, #tpu.memory_space<vmem>>, vector<1x32xf32>
    %38 = vector.broadcast %37 : vector<1x32xf32> to vector<8x32xf32>
    %39 = arith.mulf %36, %38 : vector<8x32xf32>
    %c0_20 = arith.constant 0 : index
    %c0_21 = arith.constant 0 : index
    %40 = vector.load %arg7[%c0_20, %c0_21] : memref<1x32xf32, #tpu.memory_space<vmem>>, vector<1x32xf32>
    %41 = vector.broadcast %40 : vector<1x32xf32> to vector<8x32xf32>
    %42 = arith.addf %39, %41 : vector<8x32xf32>
    %c0_22 = arith.constant 0 : index
    %c0_23 = arith.constant 0 : index
    %43 = vector.load %arg8[%c0_22, %c0_23] : memref<8x32xf32, #tpu.memory_space<vmem>>, vector<8x32xf32>
    tpu.vector_store %arg8[%c0_22, %c0_23], %42 {strides = array<i32>} : memref<8x32xf32, #tpu.memory_space<vmem>>, vector<8x32xf32>,
    return
  }
  func.func @transform_0(%arg0: i32) -> (i32, i32) {
    %c0_i32 = arith.constant 0 : i32
    %c0_i32_0 = arith.constant 0 : i32
    return %arg0, %c0_i32 : i32, i32
  }
  func.func @transform_1(%arg0: i32) -> (i32, i32) {
    %c0_i32 = arith.constant 0 : i32
    %c0_i32_0 = arith.constant 0 : i32
    %c0_i32_1 = arith.constant 0 : i32
    return %c0_i32, %c0_i32_0 : i32, i32
  }
  func.func @transform_2(%arg0: i32) -> (i32, i32) {
    %c0_i32 = arith.constant 0 : i32
    %c0_i32_0 = arith.constant 0 : i32
    %c0_i32_1 = arith.constant 0 : i32
    return %c0_i32, %c0_i32_0 : i32, i32
  }
  func.func @transform_3(%arg0: i32) -> (i32, i32) {
    %c0_i32 = arith.constant 0 : i32
    %c0_i32_0 = arith.constant 0 : i32
    %c0_i32_1 = arith.constant 0 : i32
    return %c0_i32, %c0_i32_0 : i32, i32
  }
  func.func @transform_4(%arg0: i32) -> (i32, i32) {
    %c0_i32 = arith.constant 0 : i32
    %c0_i32_0 = arith.constant 0 : i32
    %c0_i32_1 = arith.constant 0 : i32
    return %c0_i32, %c0_i32_0 : i32, i32
  }
  func.func @transform_5(%arg0: i32) -> (i32, i32) {
    %c0_i32 = arith.constant 0 : i32
    %c0_i32_0 = arith.constant 0 : i32
    %c0_i32_1 = arith.constant 0 : i32
    return %c0_i32, %c0_i32_0 : i32, i32
  }
  func.func @transform_6(%arg0: i32) -> (i32, i32) {
    %c0_i32 = arith.constant 0 : i32
    %c0_i32_0 = arith.constant 0 : i32
    %c0_i32_1 = arith.constant 0 : i32
    return %c0_i32, %c0_i32_0 : i32, i32
  }
  func.func @transform_7(%arg0: i32) -> (i32, i32) {
    %c0_i32 = arith.constant 0 : i32
    %c0_i32_0 = arith.constant 0 : i32
    return %arg0, %c0_i32 : i32, i32
  }
}

module attributes {stable_mosaic.version = 11 : i64} {
  func.func @_res_bottleneck_kernel(%arg0: i32, %arg1: memref<8x32xf32, #tpu.memory_space<vmem>>, %arg2: memref<32x8xf32, #tpu.memory_space<vmem>>, %arg3: memref<1x8xf32, #tpu.memory_space<vmem>>, %arg4: memref<8x32xf32, #tpu.memory_space<vmem>>, %arg5: memref<1x32xf32, #tpu.memory_space<vmem>>, %arg6: memref<1x32xf32, #tpu.memory_space<vmem>>, %arg7: memref<1x32xf32, #tpu.memory_space<vmem>>, %arg8: memref<8x32xf32, #tpu.memory_space<vmem>>) attributes {dimension_semantics = [#tpu.dimension_semantics<parallel>], iteration_bounds = array<i64: 2>, scalar_prefetch = 0 : i64, scratch_operands = 0 : i64, tpu.core_type = #tpu.core_type<tc>, window_params = [{transform_indices = @transform_0, window_bounds = array<i64: 8, 32>}, {pipeline_mode = #tpu.pipeline_mode<synchronous>, transform_indices = @transform_1, window_bounds = array<i64: 32, 8>}, {pipeline_mode = #tpu.pipeline_mode<synchronous>, transform_indices = @transform_2, window_bounds = array<i64: 1, 8>}, {pipeline_mode = #tpu.pipeline_mode<synchronous>, transform_indices = @transform_3, window_bounds = array<i64: 8, 32>}, {pipeline_mode = #tpu.pipeline_mode<synchronous>, transform_indices = @transform_4, window_bounds = array<i64: 1, 32>}, {pipeline_mode = #tpu.pipeline_mode<synchronous>, transform_indices = @transform_5, window_bounds = array<i64: 1, 32>}, {pipeline_mode = #tpu.pipeline_mode<synchronous>, transform_indices = @transform_6, window_bounds = array<i64: 1, 32>}, {transform_indices = @transform_7, window_bounds = array<i64: 8, 32>}]} {
    %c0 = arith.constant 0 : index
    %c0_0 = arith.constant 0 : index
    %0 = vector.load %arg1[%c0, %c0_0] : memref<8x32xf32, #tpu.memory_space<vmem>>, vector<8x32xf32>
    %c0_1 = arith.constant 0 : index
    %c0_2 = arith.constant 0 : index
    %1 = vector.load %arg2[%c0_1, %c0_2] : memref<32x8xf32, #tpu.memory_space<vmem>>, vector<32x8xf32>
    %cst = arith.constant dense<0.000000e+00> : vector<8x8xf32>
    %2 = tpu.matmul %0, %1, %cst {dimension_numbers = #tpu.dot_dimension_numbers<[1], [0], [0], [1], [0, 0, 1, 1], [], []>} : vector<8x32xf32>, vector<32x8xf32>, vector<8x8xf32> -> vector<8x8xf32>
    %c0_3 = arith.constant 0 : index
    %c0_4 = arith.constant 0 : index
    %3 = vector.load %arg3[%c0_3, %c0_4] : memref<1x8xf32, #tpu.memory_space<vmem>>, vector<1x8xf32>
    %4 = vector.broadcast %3 : vector<1x8xf32> to vector<8x8xf32>
    %5 = arith.addf %2, %4 : vector<8x8xf32>
    %cst_5 = arith.constant 0.000000e+00 : f32
    %6 = vector.broadcast %cst_5 : f32 to vector<8x8xf32>
    %7 = arith.cmpf oge, %5, %6 : vector<8x8xf32>
    %cst_6 = arith.constant 0.00999999977 : f32
    %8 = vector.broadcast %cst_6 : f32 to vector<8x8xf32>
    %9 = arith.mulf %8, %5 : vector<8x8xf32>
    %10 = arith.select %7, %5, %9 : vector<8x8xi1>, vector<8x8xf32>
    %c0_7 = arith.constant 0 : index
    %c0_8 = arith.constant 0 : index
    %11 = vector.load %arg4[%c0_7, %c0_8] : memref<8x32xf32, #tpu.memory_space<vmem>>, vector<8x32xf32>
    %cst_9 = arith.constant dense<0.000000e+00> : vector<8x32xf32>
    %12 = tpu.matmul %10, %11, %cst_9 {dimension_numbers = #tpu.dot_dimension_numbers<[1], [0], [0], [1], [0, 0, 1, 1], [], []>} : vector<8x8xf32>, vector<8x32xf32>, vector<8x32xf32> -> vector<8x32xf32>
    %c0_10 = arith.constant 0 : index
    %c0_11 = arith.constant 0 : index
    %13 = vector.load %arg5[%c0_10, %c0_11] : memref<1x32xf32, #tpu.memory_space<vmem>>, vector<1x32xf32>
    %14 = vector.broadcast %13 : vector<1x32xf32> to vector<8x32xf32>
    %15 = arith.addf %12, %14 : vector<8x32xf32>
    %16 = arith.addf %15, %0 : vector<8x32xf32>
    %cst_12 = arith.constant dense<0.000000e+00> : vector<8xf32>
    %17 = vector.multi_reduction <add>, %16, %cst_12 [1] : vector<8x32xf32> to vector<8xf32>
    %18 = vector.shape_cast %17 : vector<8xf32> to vector<8x1xf32>
    %cst_13 = arith.constant 3.200000e+01 : f32
    %19 = vector.broadcast %cst_13 : f32 to vector<8x1xf32>
    %20 = arith.divf %18, %19 : vector<8x1xf32>
    %21 = arith.mulf %16, %16 : vector<8x32xf32>
    %cst_14 = arith.constant dense<0.000000e+00> : vector<8xf32>
    %22 = vector.multi_reduction <add>, %21, %cst_14 [1] : vector<8x32xf32> to vector<8xf32>
    %23 = vector.shape_cast %22 : vector<8xf32> to vector<8x1xf32>
    %cst_15 = arith.constant 3.200000e+01 : f32
    %24 = vector.broadcast %cst_15 : f32 to vector<8x1xf32>
    %25 = arith.divf %23, %24 : vector<8x1xf32>
    %26 = arith.mulf %20, %20 : vector<8x1xf32>
    %27 = arith.subf %25, %26 : vector<8x1xf32>
    %cst_16 = arith.constant 0.000000e+00 : f32
    %28 = vector.broadcast %cst_16 : f32 to vector<8x1xf32>
    %29 = arith.maximumf %27, %28 : vector<8x1xf32>
    %30 = vector.broadcast %20 : vector<8x1xf32> to vector<8x32xf32>
    %31 = arith.subf %16, %30 : vector<8x32xf32>
    %cst_17 = arith.constant 9.99999974E-6 : f32
    %32 = vector.broadcast %cst_17 : f32 to vector<8x1xf32>
    %33 = arith.addf %29, %32 : vector<8x1xf32>
    %34 = math.rsqrt %33 : vector<8x1xf32>
    %35 = vector.broadcast %34 : vector<8x1xf32> to vector<8x32xf32>
    %36 = arith.mulf %31, %35 : vector<8x32xf32>
    %c0_18 = arith.constant 0 : index
    %c0_19 = arith.constant 0 : index
    %37 = vector.load %arg6[%c0_18, %c0_19] : memref<1x32xf32, #tpu.memory_space<vmem>>, vector<1x32xf32>
    %38 = vector.broadcast %37 : vector<1x32xf32> to vector<8x32xf32>
    %39 = arith.mulf %36, %38 : vector<8x32xf32>
    %c0_20 = arith.constant 0 : index
    %c0_21 = arith.constant 0 : index
    %40 = vector.load %arg7[%c0_20, %c0_21] : memref<1x32xf32, #tpu.memory_space<vmem>>, vector<1x32xf32>
    %41 = vector.broadcast %40 : vector<1x32xf32> to vector<8x32xf32>
    %42 = arith.addf %39, %41 : vector<8x32xf32>
    %c0_22 = arith.constant 0 : index
    %c0_23 = arith.constant 0 : index
    %43 = vector.load %arg8[%c0_22, %c0_23] : memref<8x32xf32, #tpu.memory_space<vmem>>, vector<8x32xf32>
    tpu.vector_store %arg8[%c0_22, %c0_23], %42 {strides = array<i32>} : memref<8x32xf32, #tpu.memory_space<vmem>>, vector<8x32xf32>,
    return
  }
  func.func @transform_0(%arg0: i32) -> (i32, i32) {
    %c0_i32 = arith.constant 0 : i32
    %c0_i32_0 = arith.constant 0 : i32
    return %arg0, %c0_i32 : i32, i32
  }
  func.func @transform_1(%arg0: i32) -> (i32, i32) {
    %c0_i32 = arith.constant 0 : i32
    %c0_i32_0 = arith.constant 0 : i32
    %c0_i32_1 = arith.constant 0 : i32
    return %c0_i32, %c0_i32_0 : i32, i32
  }
  func.func @transform_2(%arg0: i32) -> (i32, i32) {
    %c0_i32 = arith.constant 0 : i32
    %c0_i32_0 = arith.constant 0 : i32
    %c0_i32_1 = arith.constant 0 : i32
    return %c0_i32, %c0_i32_0 : i32, i32
  }
  func.func @transform_3(%arg0: i32) -> (i32, i32) {
    %c0_i32 = arith.constant 0 : i32
    %c0_i32_0 = arith.constant 0 : i32
    %c0_i32_1 = arith.constant 0 : i32
    return %c0_i32, %c0_i32_0 : i32, i32
  }
  func.func @transform_4(%arg0: i32) -> (i32, i32) {
    %c0_i32 = arith.constant 0 : i32
    %c0_i32_0 = arith.constant 0 : i32
    %c0_i32_1 = arith.constant 0 : i32
    return %c0_i32, %c0_i32_0 : i32, i32
  }
  func.func @transform_5(%arg0: i32) -> (i32, i32) {
    %c0_i32 = arith.constant 0 : i32
    %c0_i32_0 = arith.constant 0 : i32
    %c0_i32_1 = arith.constant 0 : i32
    return %c0_i32, %c0_i32_0 : i32, i32
  }
  func.func @transform_6(%arg0: i32) -> (i32, i32) {
    %c0_i32 = arith.constant 0 : i32
    %c0_i32_0 = arith.constant 0 : i32
    %c0_i32_1 = arith.constant 0 : i32
    return %c0_i32, %c0_i32_0 : i32, i32
  }
  func.func @transform_7(%arg0: i32) -> (i32, i32) {
    %c0_i32 = arith.constant 0 : i32
    %c0_i32_0 = arith.constant 0 : i32
    return %arg0, %c0_i32 : i32, i32
  }
}

</mosaic_0001>

<bundles_post_ra>
// kernel: tpu_custom_call.1
= control target key start
LH: loop header
LB: loop body
LE: loop exit
PB: predicated region body
PF: predicated region fallthrough
CT: control target
= control target key end

     0   :  { %12 = vsyncpa [#allocation3], 0  ;;  %s881_s0 = inlined_call_operand.vmem [shape: f32[16,32], index: 0, kind: input, shape index: {}]   ;;  %s882_s1 = inlined_call_operand.vmem [shape: f32[32,8], index: 1, kind: input, shape index: {}]   ;;  %s883_s2 = inlined_call_operand.vmem [shape: f32[1,8], index: 2, kind: input, shape index: {}]   ;;  %s884_s3 = inlined_call_operand.vmem [shape: f32[8,32], index: 3, kind: input, shape index: {}]   ;;  %s885_s4 = inlined_call_operand.vmem [shape: f32[1,32], index: 4, kind: input, shape index: {}]   ;;  %s886_s5 = inlined_call_operand.vmem [shape: f32[1,32], index: 5, kind: input, shape index: {}]   ;;  %s887_s6 = inlined_call_operand.vmem [shape: f32[1,32], index: 6, kind: input, shape index: {}]   ;;  %s888_s7 = inlined_call_operand.hbm [shape: f32[16,32], index: 7, kind: output, shape index: {}]  }
   0x1   :  { %14 = vsyncpa [#allocation3 + $0x1], 0  ;;  %s750_s24 = smov 0   ;;  %s752_s25 = smov 0  }
   0x2   :  { %s754_s26 = smov 0   ;;  %s756_s27 = smov 0  }
   0x3 LB: > { %s771_s28 = sadd.s32 4294967295, %s704_s27   ;;  %s553_s29 = sadd.s32 4294967294, %s704_s27   ;;  %s704_s27 = sphi %s756_s27, %s894_s27   ;;  %s700_s26 = sphi %s754_s26, %s893_s26   ;;  %s696_s25 = sphi %s752_s25, %s892_s25   ;;  %s692_s24 = sphi %s750_s24, %s891_s24  }
   0x4   : > { %s775_s30 = sadd.s32 1, %s704_s27   ;;  %s179_s8 = sadd.s32 1, %s700_s26 }
   0x5   : > { %s176_s9 = ssub.s32 %s704_s27, %s775_s30  ;;  %p189_p0 = scmp.ne.s32.totalorder %s700_s26, %s696_s25 }
   0x6   : > { %p177_p1 = scmp.eq.s32.totalorder %s176_s9, 0  ;;  %p190_p2 = scmp.eq.s32.totalorder %s771_s28, 1 }
   0x7   : > { %p195_p3 = scmp.ne.s32.totalorder %s696_s25, %s692_s24  ;;  %p196_p4 = scmp.eq.s32.totalorder %s553_s29, 1 }
   0x8   : > { %s786_s10 = scalar_select %p177_p1, %s700_s26, %s179_s8  }
   0x9   : > { %p788_p5 = por %p190_p2, %p189_p0  ;;  %p792_p6 = por %p196_p4, %p195_p3 }
   0xa   : > { %p556_p7 = scmp.ge.s32.totalorder %s704_s27, 1  ;;  %p239_p8 = scmp.lt.s32.totalorder %s704_s27, 3 }
   0xc   : > { %p240_p9 = pnand %p556_p7, %p239_p8 }
   0xd   : > { %v275_v0 = vld [vmem:[%s882_s1] sm:$0xff] (!%p240_p9)  ;;  %v276_v1 = vld [vmem:[%s882_s1 + $0x8] sm:$0xff] (!%p240_p9)  ;;  %v277_v2 = vld [vmem:[%s882_s1 + $0x10] sm:$0xff] (!%p240_p9)  ;;  %v706_v3 = vmov (!%p240_p9), 0.0|0.0   ;;  %vm707_vm0 = vmmov (!%p240_p9), 0   ;;  %v708_v6 = vmov (!%p240_p9), 0.0  }
   0xe   : > { %243 = sbr.rel (%p240_p9) target bundleno = 645 (0x285), region = 48  ;;  %592 = vmatprep.subr.bf16.mxu0 (!%p240_p9), %v706_v3  ;;  %v593_v4 = vpack.c.bf16 (!%p240_p9), %v276_v1, %v275_v0  ;;  %v278_v5 = vld [vmem:[%s882_s1 + $0x18] sm:$0xff] (!%p240_p9)  ;;  %584 = vmatprep.mubr.msk.f32.mxu0 (!%p240_p9), %vm707_vm0, %v708_v6  ;;  %p270_p10 = scmp.lt.s32.totalorder (!%p240_p9), %s771_s28, 1  ;;  %vm286_vm1 = vcmask (!%p240_p9), 261120   ;;  %v363_v9 = vld [vmem:[%s884_s3] sm:$0xff] (!%p240_p9)  ;;  %vm371_vm3 = vcmask (!%p240_p9), 64512  }
   0xf   : > { %587 = vmatprep.subr.mxu1 (!%p240_p9), %v708_v6  ;;  %589 = vmatprep.mubr.msk.f32.mxu1 (!%p240_p9), %vm707_vm0, %v708_v6  ;;  %v596_v7 = vpack.c.bf16 (!%p240_p9), %v278_v5, %v277_v2  ;;  %v559_v10 = vld [vmem:[%s883_s2] ss:$0 sm:$0xff] (!%p240_p9)  ;;  %s267_s18 = sand.u32 (!%p240_p9), 1, %s696_s25   ;;  %s566_s29 = sshll.u32 (!%p240_p9), %s771_s28, 7 }
  0x10   : > { %594 = vmatpush3.bf16.msra.mxu0 (!%p240_p9), %v593_v4  ;;  %588 = vmatpush3.msra.mxu1 (!%p240_p9), %v363_v9  ;;  %v561_v16 = vld [vmem:[%s885_s4] ss:$0 sm:$0xff] (!%p240_p9)  ;;  %s557_s19 = sshll.u32 (!%p240_p9), %s267_s18, 3  ;;  %s838_s15 = scalar_lea.hbm (!%p240_p9), %s888_s7, %s566_s29 }
  0x11   : > { %595 = vmatprep.subr.bf16.mxu0 (!%p240_p9), %v706_v3  ;;  %v563_v34 = vld [vmem:[%s886_s5] ss:$0 sm:$0xff] (!%p240_p9)  ;;  %s481_s16 = scalar_lea.sflag (!%p240_p9), [#allocation3], %s267_s18 }
  0x12   : > { %v564_v36 = vld [vmem:[%s887_s6] ss:$0 sm:$0xff] (!%p240_p9) }
  0x14   : > { %597 = vmatpush3.bf16.msra.mxu0 (!%p240_p9), %v596_v7 }
  0x15   : > { %s271_s21 = scalar_select %p270_p10, %s771_s28, 1 }
  0x16   : > { %s709_s28 = smov [#allocation2]  }
  0x17   : > { %s558_s22 = sshll.u32 %s271_s21, 3 }
  0x18   : > { %s273_s8 = scalar_lea.vmem %s881_s0, %s558_s22 }
  0x19   : > { %v274_v8 = vld [vmem:[%s273_s8] sm:$0xff]  ;;  %s269_s8 = scalar_lea.vmem [#allocation2], %s557_s19  ;;  %s646_s19 = sshll.u32 %s709_s28, 4  ;;  %s647_s19 = int_to_ptr.vmem [resolvable:$false] %s646_s19 }
  0x1a   : > { %585 = vmatmul.mubr.msk.f32.vlgmr.msra.gmra.mrb[0].mxu0 %vm286_vm1, %v274_v8  ;;  %s494_s9 = sshll.u32 %s269_s8, 4  ;;  %s648_s20 = scalar_lea.vmem %s647_s19, 256  ;;  %s840_s9 = int_to_ptr.vmem [resolvable:$true] %s494_s9 }
  0x1b   : > { %s642_s17 = scalar_lea.vmem %s840_s9, 128  ;;  %p649_p0 = scmp.lt.s32.totalorder %s840_s9, %s647_s19 }
  0x1c   : > { %p643_p11 = scmp.ne.s32.totalorder %s840_s9, %s642_s17  ;;  %p650_p1 = scmp.lt.s32.totalorder %s648_s20, %s642_s17 }
  0x1e   : > { %p644_p12 = pnand %p643_p11, %p788_p5  ;;  %p651_p2 = por %p650_p1, %p649_p0 }
  0x20   : > { %p645_p13 = pneg %p644_p12 }
  0x22   : > { %p652_p3 = pnand %p651_p2, %p645_p13 }
  0xed   : > { %v356_v11 = vpop.f32.mrb[0].mxu0 }
  0xee   : > { %v357_v12 = vadd.f32 %v559_v10, %v356_v11  ;;  %v586_v13 = vpop.f32.mrb[1].mxu0 }
  0xf0   : > { %vm360_vm2 = vcmp.ge.f32.partialorder %v357_v12, 0.0  ;;  %v361_v14 = vmul.f32 0.01, %v357_v12 }
  0xf2   : > { %v362_v15 = vsel %vm360_vm2, %v357_v12, %v361_v14 }
  0xf3   : > { %590 = vmatmul.mubr.msk.f32.vlgmr.msra.gmra.mrb[0].mxu1 %vm371_vm3, %v362_v15 }
 0x1c6   : > { %v441_v17 = vpop.f32.mrb[0].mxu1 }
 0x1c7   : > { %v442_v18 = vadd.f32 %v561_v16, %v441_v17  ;;  %v591_v19 = vpop.f32.mrb[1].mxu1 }
 0x1c9   : > { %v445_v20 = vadd.f32 %v442_v18, %v274_v8 }
 0x1cb   : > { %v446_v21 = vsel %vm286_vm1, %v445_v20, 0.0  ;;  %v451_v22 = vmul.f32 %v445_v20, %v445_v20 }
 0x1cc   : > { %447 = vadd.xlane.f32.xlu0 %v446_v21 }
 0x1cd   : > { %v452_v23 = vsel %vm286_vm1, %v451_v22, 0.0 }
 0x1d0   : > { %453 = vadd.xlane.f32.xlu0 %v452_v23 }
 0x259   : > { %v448_v24 = vpop.xlane.xlu0 %447 }
 0x25a   : > { %v450_v25 = vmul.f32 0.03125, %v448_v24 }
 0x25c   : > { %v456_v27 = vmul.f32 %v450_v25, %v450_v25  ;;  %v459_v32 = vsub.f32 %v445_v20, %v450_v25 }
 0x25d   : > { %v454_v26 = vpop.xlane.xlu0 %453 }
 0x25e   : > { %v455_v28 = vmul.f32 0.03125, %v454_v26 }
 0x260   : > { %v457_v29 = vsub.f32 %v455_v28, %v456_v27 }
 0x262   : > { %v458_v30 = vmax.f32 %v457_v29, 0.0 }
 0x264   : > { %v460_v31 = vadd.f32 1e-05, %v458_v30 }
 0x266   : > { %640 = vrsqrt.f32 %v460_v31 }
 0x270   : > { %v641_v33 = vpop.eup %640 }
 0x271   : > { %v462_v35 = vmul.f32 %v641_v33, %v459_v32 }
 0x273   : > { %v470_v37 = vmul.f32 %v563_v34, %v462_v35 }
 0x275   : > { %v478_v38 = vadd.f32 %v564_v36, %v470_v37 }
 0x277   : > { %479 = vst.msk [vmem:[%s269_s8] sm:$0xff] %vm286_vm1, %v478_v38 }
 0x278   : > { %655 = shalt.err (!%p652_p3)
}
 0x279   : > { %s656_s18 = scalar_lea.hbm %s838_s15, 128  ;;  %s660_s23 = scalar_lea.hbm %s888_s7, 256 }
 0x27a   : > { %p657_p4 = scmp.ne.s32.totalorder %s838_s15, %s656_s18  ;;  %p661_p9 = scmp.lt.u32.totalorder %s838_s15, %s888_s7 }
 0x27b   : > { %p662_p10 = scmp.lt.u32.totalorder %s660_s23, %s656_s18  ;;  %p664_p12 = scmp.lt.u32.totalorder %s656_s18, %s838_s15 }
 0x27c   : > { %p658_p7 = pnand %p657_p4, %p788_p5 }
 0x27d   : > { %p663_p11 = por %p662_p10, %p661_p9 }
 0x27e   : > { %p659_p8 = pneg %p658_p7 }
 0x27f   : > { %p665_p13 = por %p664_p12, %p663_p11 }
 0x281   : > { %p666_p0 = pnand %p665_p13, %p659_p8 }
 0x283   : > { %669 = shalt.err (!%p666_p0)
}
 0x284   : > { %598 = dma.vmem_to_hbm [thread:$0]  (%p788_p5), %s840_s9, 128, %s838_s15, %s481_s16  }
 0x285 PF: > { %p604_p1 = scmp.ge.s32.totalorder %s704_s27, 2  ;;  %s506_s13 = sand.u32 1, %s692_s24  }
 0x286   : > { %s507_s14 = scalar_lea.sflag [#allocation3], %s506_s13 }
 0x287   : > { %p601_p2 = pnand %p604_p1, %p792_p6 }
 0x289   : > { %687 = dma.done.wait (!%p601_p2), %s507_s14, 128  }
 0x28a   : > { %689 = vsyncadd (!%p601_p2), %s507_s14, 4294967168  ;;  %p17_p3 = scmp.ge.s32.totalorder %s775_s30, 4   ;;  %s891_s24 = smov %s696_s25 }
 0x28b   : > { %s892_s25 = smov %s700_s26  ;;  %s893_s26 = smov %s786_s10 }
 0x28c   : > { %s894_s27 = smov %s775_s30  ;;  %19 = sbr.rel (!%p17_p3) target bundleno = 3 (0x3), region = 83 }
 0x293   :  { %512 = vsyncpa [#allocation3], 1 }
 0x294   :  { %514 = vsyncpa [#allocation3 + $0x1], 1 }

// kernel: tpu_custom_call.1
= control target key start
LH: loop header
LB: loop body
LE: loop exit
PB: predicated region body
PF: predicated region fallthrough
CT: control target
= control target key end

     0   :  { %12 = vsyncpa [#allocation3], 0  ;;  %s881_s0 = inlined_call_operand.vmem [shape: f32[16,32], index: 0, kind: input, shape index: {}]   ;;  %s882_s1 = inlined_call_operand.vmem [shape: f32[32,8], index: 1, kind: input, shape index: {}]   ;;  %s883_s2 = inlined_call_operand.vmem [shape: f32[1,8], index: 2, kind: input, shape index: {}]   ;;  %s884_s3 = inlined_call_operand.vmem [shape: f32[8,32], index: 3, kind: input, shape index: {}]   ;;  %s885_s4 = inlined_call_operand.vmem [shape: f32[1,32], index: 4, kind: input, shape index: {}]   ;;  %s886_s5 = inlined_call_operand.vmem [shape: f32[1,32], index: 5, kind: input, shape index: {}]   ;;  %s887_s6 = inlined_call_operand.vmem [shape: f32[1,32], index: 6, kind: input, shape index: {}]   ;;  %s888_s7 = inlined_call_operand.hbm [shape: f32[16,32], index: 7, kind: output, shape index: {}]  }
   0x1   :  { %14 = vsyncpa [#allocation3 + $0x1], 0  ;;  %s750_s24 = smov 0   ;;  %s752_s25 = smov 0  }
   0x2   :  { %s754_s26 = smov 0   ;;  %s756_s27 = smov 0  }
   0x3 LB: > { %s771_s28 = sadd.s32 4294967295, %s704_s27   ;;  %s553_s29 = sadd.s32 4294967294, %s704_s27   ;;  %s704_s27 = sphi %s756_s27, %s894_s27   ;;  %s700_s26 = sphi %s754_s26, %s893_s26   ;;  %s696_s25 = sphi %s752_s25, %s892_s25   ;;  %s692_s24 = sphi %s750_s24, %s891_s24  }
   0x4   : > { %s775_s30 = sadd.s32 1, %s704_s27   ;;  %s179_s8 = sadd.s32 1, %s700_s26 }
   0x5   : > { %s176_s9 = ssub.s32 %s704_s27, %s775_s30  ;;  %p189_p0 = scmp.ne.s32.totalorder %s700_s26, %s696_s25 }
   0x6   : > { %p177_p1 = scmp.eq.s32.totalorder %s176_s9, 0  ;;  %p190_p2 = scmp.eq.s32.totalorder %s771_s28, 1 }
   0x7   : > { %p195_p3 = scmp.ne.s32.totalorder %s696_s25, %s692_s24  ;;  %p196_p4 = scmp.eq.s32.totalorder %s553_s29, 1 }
   0x8   : > { %s786_s10 = scalar_select %p177_p1, %s700_s26, %s179_s8  }
   0x9   : > { %p788_p5 = por %p190_p2, %p189_p0  ;;  %p792_p6 = por %p196_p4, %p195_p3 }
   0xa   : > { %p556_p7 = scmp.ge.s32.totalorder %s704_s27, 1  ;;  %p239_p8 = scmp.lt.s32.totalorder %s704_s27, 3 }
   0xc   : > { %p240_p9 = pnand %p556_p7, %p239_p8 }
   0xd   : > { %v275_v0 = vld [vmem:[%s882_s1] sm:$0xff] (!%p240_p9)  ;;  %v276_v1 = vld [vmem:[%s882_s1 + $0x8] sm:$0xff] (!%p240_p9)  ;;  %v277_v2 = vld [vmem:[%s882_s1 + $0x10] sm:$0xff] (!%p240_p9)  ;;  %v706_v3 = vmov (!%p240_p9), 0.0|0.0   ;;  %vm707_vm0 = vmmov (!%p240_p9), 0   ;;  %v708_v6 = vmov (!%p240_p9), 0.0  }
   0xe   : > { %243 = sbr.rel (%p240_p9) target bundleno = 645 (0x285), region = 48  ;;  %592 = vmatprep.subr.bf16.mxu0 (!%p240_p9), %v706_v3  ;;  %v593_v4 = vpack.c.bf16 (!%p240_p9), %v276_v1, %v275_v0  ;;  %v278_v5 = vld [vmem:[%s882_s1 + $0x18] sm:$0xff] (!%p240_p9)  ;;  %584 = vmatprep.mubr.msk.f32.mxu0 (!%p240_p9), %vm707_vm0, %v708_v6  ;;  %p270_p10 = scmp.lt.s32.totalorder (!%p240_p9), %s771_s28, 1  ;;  %vm286_vm1 = vcmask (!%p240_p9), 261120   ;;  %v363_v9 = vld [vmem:[%s884_s3] sm:$0xff] (!%p240_p9)  ;;  %vm371_vm3 = vcmask (!%p240_p9), 64512  }
   0xf   : > { %587 = vmatprep.subr.mxu1 (!%p240_p9), %v708_v6  ;;  %589 = vmatprep.mubr.msk.f32.mxu1 (!%p240_p9), %vm707_vm0, %v708_v6  ;;  %v596_v7 = vpack.c.bf16 (!%p240_p9), %v278_v5, %v277_v2  ;;  %v559_v10 = vld [vmem:[%s883_s2] ss:$0 sm:$0xff] (!%p240_p9)  ;;  %s267_s18 = sand.u32 (!%p240_p9), 1, %s696_s25   ;;  %s566_s29 = sshll.u32 (!%p240_p9), %s771_s28, 7 }
  0x10   : > { %594 = vmatpush3.bf16.msra.mxu0 (!%p240_p9), %v593_v4  ;;  %588 = vmatpush3.msra.mxu1 (!%p240_p9), %v363_v9  ;;  %v561_v16 = vld [vmem:[%s885_s4] ss:$0 sm:$0xff] (!%p240_p9)  ;;  %s557_s19 = sshll.u32 (!%p240_p9), %s267_s18, 3  ;;  %s838_s15 = scalar_lea.hbm (!%p240_p9), %s888_s7, %s566_s29 }
  0x11   : > { %595 = vmatprep.subr.bf16.mxu0 (!%p240_p9), %v706_v3  ;;  %v563_v34 = vld [vmem:[%s886_s5] ss:$0 sm:$0xff] (!%p240_p9)  ;;  %s481_s16 = scalar_lea.sflag (!%p240_p9), [#allocation3], %s267_s18 }
  0x12   : > { %v564_v36 = vld [vmem:[%s887_s6] ss:$0 sm:$0xff] (!%p240_p9) }
  0x14   : > { %597 = vmatpush3.bf16.msra.mxu0 (!%p240_p9), %v596_v7 }
  0x15   : > { %s271_s21 = scalar_select %p270_p10, %s771_s28, 1 }
  0x16   : > { %s709_s28 = smov [#allocation2]  }
  0x17   : > { %s558_s22 = sshll.u32 %s271_s21, 3 }
  0x18   : > { %s273_s8 = scalar_lea.vmem %s881_s0, %s558_s22 }
  0x19   : > { %v274_v8 = vld [vmem:[%s273_s8] sm:$0xff]  ;;  %s269_s8 = scalar_lea.vmem [#allocation2], %s557_s19  ;;  %s646_s19 = sshll.u32 %s709_s28, 4  ;;  %s647_s19 = int_to_ptr.vmem [resolvable:$false] %s646_s19 }
  0x1a   : > { %585 = vmatmul.mubr.msk.f32.vlgmr.msra.gmra.mrb[0].mxu0 %vm286_vm1, %v274_v8  ;;  %s494_s9 = sshll.u32 %s269_s8, 4  ;;  %s648_s20 = scalar_lea.vmem %s647_s19, 256  ;;  %s840_s9 = int_to_ptr.vmem [resolvable:$true] %s494_s9 }
  0x1b   : > { %s642_s17 = scalar_lea.vmem %s840_s9, 128  ;;  %p649_p0 = scmp.lt.s32.totalorder %s840_s9, %s647_s19 }
  0x1c   : > { %p643_p11 = scmp.ne.s32.totalorder %s840_s9, %s642_s17  ;;  %p650_p1 = scmp.lt.s32.totalorder %s648_s20, %s642_s17 }
  0x1e   : > { %p644_p12 = pnand %p643_p11, %p788_p5  ;;  %p651_p2 = por %p650_p1, %p649_p0 }
  0x20   : > { %p645_p13 = pneg %p644_p12 }
  0x22   : > { %p652_p3 = pnand %p651_p2, %p645_p13 }
  0xed   : > { %v356_v11 = vpop.f32.mrb[0].mxu0 }
  0xee   : > { %v357_v12 = vadd.f32 %v559_v10, %v356_v11  ;;  %v586_v13 = vpop.f32.mrb[1].mxu0 }
  0xf0   : > { %vm360_vm2 = vcmp.ge.f32.partialorder %v357_v12, 0.0  ;;  %v361_v14 = vmul.f32 0.01, %v357_v12 }
  0xf2   : > { %v362_v15 = vsel %vm360_vm2, %v357_v12, %v361_v14 }
  0xf3   : > { %590 = vmatmul.mubr.msk.f32.vlgmr.msra.gmra.mrb[0].mxu1 %vm371_vm3, %v362_v15 }
 0x1c6   : > { %v441_v17 = vpop.f32.mrb[0].mxu1 }
 0x1c7   : > { %v442_v18 = vadd.f32 %v561_v16, %v441_v17  ;;  %v591_v19 = vpop.f32.mrb[1].mxu1 }
 0x1c9   : > { %v445_v20 = vadd.f32 %v442_v18, %v274_v8 }
 0x1cb   : > { %v446_v21 = vsel %vm286_vm1, %v445_v20, 0.0  ;;  %v451_v22 = vmul.f32 %v445_v20, %v445_v20 }
 0x1cc   : > { %447 = vadd.xlane.f32.xlu0 %v446_v21 }
 0x1cd   : > { %v452_v23 = vsel %vm286_vm1, %v451_v22, 0.0 }
 0x1d0   : > { %453 = vadd.xlane.f32.xlu0 %v452_v23 }
 0x259   : > { %v448_v24 = vpop.xlane.xlu0 %447 }
 0x25a   : > { %v450_v25 = vmul.f32 0.03125, %v448_v24 }
 0x25c   : > { %v456_v27 = vmul.f32 %v450_v25, %v450_v25  ;;  %v459_v32 = vsub.f32 %v445_v20, %v450_v25 }
 0x25d   : > { %v454_v26 = vpop.xlane.xlu0 %453 }
 0x25e   : > { %v455_v28 = vmul.f32 0.03125, %v454_v26 }
 0x260   : > { %v457_v29 = vsub.f32 %v455_v28, %v456_v27 }
 0x262   : > { %v458_v30 = vmax.f32 %v457_v29, 0.0 }
 0x264   : > { %v460_v31 = vadd.f32 1e-05, %v458_v30 }
 0x266   : > { %640 = vrsqrt.f32 %v460_v31 }
 0x270   : > { %v641_v33 = vpop.eup %640 }
 0x271   : > { %v462_v35 = vmul.f32 %v641_v33, %v459_v32 }
 0x273   : > { %v470_v37 = vmul.f32 %v563_v34, %v462_v35 }
 0x275   : > { %v478_v38 = vadd.f32 %v564_v36, %v470_v37 }
 0x277   : > { %479 = vst.msk [vmem:[%s269_s8] sm:$0xff] %vm286_vm1, %v478_v38 }
 0x278   : > { %655 = shalt.err (!%p652_p3)
}
 0x279   : > { %s656_s18 = scalar_lea.hbm %s838_s15, 128  ;;  %s660_s23 = scalar_lea.hbm %s888_s7, 256 }
 0x27a   : > { %p657_p4 = scmp.ne.s32.totalorder %s838_s15, %s656_s18  ;;  %p661_p9 = scmp.lt.u32.totalorder %s838_s15, %s888_s7 }
 0x27b   : > { %p662_p10 = scmp.lt.u32.totalorder %s660_s23, %s656_s18  ;;  %p664_p12 = scmp.lt.u32.totalorder %s656_s18, %s838_s15 }
 0x27c   : > { %p658_p7 = pnand %p657_p4, %p788_p5 }
 0x27d   : > { %p663_p11 = por %p662_p10, %p661_p9 }
 0x27e   : > { %p659_p8 = pneg %p658_p7 }
 0x27f   : > { %p665_p13 = por %p664_p12, %p663_p11 }
 0x281   : > { %p666_p0 = pnand %p665_p13, %p659_p8 }
 0x283   : > { %669 = shalt.err (!%p666_p0)
}
 0x284   : > { %598 = dma.vmem_to_hbm [thread:$0]  (%p788_p5), %s840_s9, 128, %s838_s15, %s481_s16  }
 0x285 PF: > { %p604_p1 = scmp.ge.s32.totalorder %s704_s27, 2  ;;  %s506_s13 = sand.u32 1, %s692_s24  }
 0x286   : > { %s507_s14 = scalar_lea.sflag [#allocation3], %s506_s13 }
 0x287   : > { %p601_p2 = pnand %p604_p1, %p792_p6 }
 0x289   : > { %687 = dma.done.wait (!%p601_p2), %s507_s14, 128  }
 0x28a   : > { %689 = vsyncadd (!%p601_p2), %s507_s14, 4294967168  ;;  %p17_p3 = scmp.ge.s32.totalorder %s775_s30, 4   ;;  %s891_s24 = smov %s696_s25 }
 0x28b   : > { %s892_s25 = smov %s700_s26  ;;  %s893_s26 = smov %s786_s10 }
 0x28c   : > { %s894_s27 = smov %s775_s30  ;;  %19 = sbr.rel (!%p17_p3) target bundleno = 3 (0x3), region = 83 }
 0x293   :  { %512 = vsyncpa [#allocation3], 1 }
 0x294   :  { %514 = vsyncpa [#allocation3 + $0x1], 1 }

</bundles_post_ra>
